<compile_context>
chip_gen: v6e
topology: v6e:2x2x1
jax: 0.10.0
libtpu: 0.0.40
codegen_flags: <defaults>
</compile_context>

<pallas_src>
import jax
import jax.numpy as jnp
from jax.experimental import pallas as pl
from jax.experimental.pallas import tpu as pltpu


def _round_up(x: int, m: int) -> int:
    return ((x + m - 1) // m) * m


def _cdiv(a: int, b: int) -> int:
    return -(-a // b)


# ----------------------------------------------------------------------------
# Kernel
# ----------------------------------------------------------------------------
def _make_mlp_kernel(layer_meta, out_cols):
    """Fused MLP kernel.

    layer_meta: tuple of (row_offset, k_padded, n_padded) per layer
                (hidden layers first, output layer last) -- all static ints.
    Refs per grid step: x (bf16), w_slab (bf16), b_slab (f32), out (f32).
    """
    num_layers = len(layer_meta)

    def kernel(x_ref, w_ref, b_ref, out_ref):
        h = x_ref[...]                                     # bf16 (TB, d_in_pad)
        for l, (ro, k, n) in enumerate(layer_meta):
            w = w_ref[ro:ro + k, :n]                       # bf16 (k, n) static view
            b = b_ref[l:l + 1, :n]                         # f32  (1, n)
            acc = jnp.dot(h, w, preferred_element_type=jnp.float32) + b
            if l < num_layers - 1:
                # ReLU / bias in f32 on the VPU; feed bf16 back into the MXU.
                h = jnp.maximum(acc, 0.0).astype(jnp.bfloat16)
            else:
                # Narrow (or lane-dense) output store.
                out_ref[...] = acc[:, :out_cols].astype(out_ref.dtype)

    return kernel


# ----------------------------------------------------------------------------
# Parameter init (PyTorch nn.Linear default: uniform +-1/sqrt(fan_in))
# ----------------------------------------------------------------------------
def init_params(key, input_dims, layer_dims, output_dims):
    params = {}
    keys = jax.random.split(key, 2 * (len(layer_dims) + 1))
    ki = 0
    prev = input_dims
    for l, dim in enumerate(layer_dims):
        bound = 1.0 / jnp.sqrt(prev)
        params[f"w{l}"] = jax.random.uniform(
            keys[ki], (prev, dim), jnp.float32, -bound, bound); ki += 1
        params[f"b{l}"] = jax.random.uniform(
            keys[ki], (1, dim), jnp.float32, -bound, bound); ki += 1
        prev = dim
    bound = 1.0 / jnp.sqrt(prev)
    params["w_out"] = jax.random.uniform(
        keys[ki], (prev, output_dims), jnp.float32, -bound, bound); ki += 1
    params["b_out"] = jax.random.uniform(
        keys[ki], (1, output_dims), jnp.float32, -bound, bound); ki += 1
    return params


# ----------------------------------------------------------------------------
# One-time packing: pad widths (hidden/out -> x128, input K -> x8), cast
# weights to bf16, and concatenate everything into two slabs.
# ----------------------------------------------------------------------------
def pack_params(params, input_dims, layer_dims, output_dims):
    num_hidden = len(layer_dims)
    d_in_pad = _round_up(input_dims, 8)
    hid_pad = [_round_up(d, 128) for d in layer_dims]
    out_n_pad = _round_up(output_dims, 128)

    real_k = [input_dims] + list(layer_dims)
    pad_k = [d_in_pad] + hid_pad
    real_n = list(layer_dims) + [output_dims]
    pad_n = hid_pad + [out_n_pad]
    max_n = max(pad_n)
    total_rows = sum(pad_k)                 # every pad_k is a multiple of 8

    w_slab = jnp.zeros((total_rows, max_n), jnp.bfloat16)
    b_slab = jnp.zeros((num_hidden + 1, max_n), jnp.float32)

    layer_meta = []
    row_off = 0
    for l in range(num_hidden + 1):
        wname = f"w{l}" if l < num_hidden else "w_out"
        bname = f"b{l}" if l < num_hidden else "b_out"
        w = params[wname]
        b = params[bname]
        w_slab = w_slab.at[row_off:row_off + real_k[l], :real_n[l]].set(
            w.astype(jnp.bfloat16))
        b_slab = b_slab.at[l, :real_n[l]].set(b.reshape(-1))
        layer_meta.append((row_off, pad_k[l], pad_n[l]))
        row_off += pad_k[l]

    return {
        "w_slab": w_slab,
        "b_slab": b_slab,
        "layer_meta": tuple(layer_meta),
        "d_in_pad": d_in_pad,
    }


# ----------------------------------------------------------------------------
# Forward wrapper
# ----------------------------------------------------------------------------
def mlp_forward(x, packed, output_dims, *, batch_tile=512):
    batch, d_in = x.shape
    w_slab = packed["w_slab"]
    b_slab = packed["b_slab"]
    layer_meta = packed["layer_meta"]
    d_in_pad = packed["d_in_pad"]

    # Balanced batch tiling: padding bounded to <8 rows per tile, and prefer
    # >=2 tiles when the batch permits so both v7x TensorCores get work.
    n_tiles = _cdiv(batch, batch_tile)
    if batch >= 16:
        n_tiles = max(n_tiles, 2)
    tb = _round_up(_cdiv(batch, n_tiles), 8)
    n_tiles = _cdiv(batch, tb)
    padded_batch = n_tiles * tb

    # Narrow output store when the head is thin (output_dims < 128); otherwise
    # keep a lane-dense padded output and slice in the wrapper.
    out_n_pad = layer_meta[-1][2]
    out_cols = output_dims if output_dims < 128 else out_n_pad

    # Single fused cast+pad of x (one op; no extra HBM round trips).
    xp = x.astype(jnp.bfloat16)
    pad_r, pad_c = padded_batch - batch, d_in_pad - d_in
    if pad_r or pad_c:
        xp = jnp.pad(xp, ((0, pad_r), (0, pad_c)))

    # Explicit VMEM budget with headroom below a 64 MiB (v7x) part.
    max_n = max(n for _, _, n in layer_meta)
    resident = w_slab.size * 2 + b_slab.size * 4          # Buffered(1) residents
    pipeline = 2 * tb * d_in_pad * 2 + 2 * tb * out_cols * 4
    working = 2 * tb * max_n * 6                          # f32 acc + bf16 act
    vmem_limit = int(min(max(2 * (resident + pipeline + working), 32 << 20),
                         48 << 20))

    kernel = _make_mlp_kernel(layer_meta, out_cols)
    out = pl.pallas_call(
        kernel,
        out_shape=jax.ShapeDtypeStruct((padded_batch, out_cols), jnp.float32),
        grid=(n_tiles,),
        in_specs=[
            pl.BlockSpec((tb, d_in_pad), lambda i: (i, 0)),
            # Parameter slabs: constant index_map + single buffer (resident).
            pl.BlockSpec(w_slab.shape, lambda i: (0, 0),
                         pipeline_mode=pl.Buffered(1)),
            pl.BlockSpec(b_slab.shape, lambda i: (0, 0),
                         pipeline_mode=pl.Buffered(1)),
        ],
        out_specs=pl.BlockSpec((tb, out_cols), lambda i: (i, 0)),
        compiler_params=pltpu.CompilerParams(
            dimension_semantics=("parallel",),
            vmem_limit_bytes=vmem_limit,
        ),
    )(xp, w_slab, b_slab)

    if padded_batch != batch:
        out = out[:batch]
    if out_cols != output_dims:
        out = out[:, :output_dims]
    return out


# ----------------------------------------------------------------------------
# Pure-JAX reference mirroring the kernel's bf16-matmul / f32-accumulate path.
# ----------------------------------------------------------------------------
def mlp_reference(x, params, layer_dims):
    h = x.astype(jnp.bfloat16)
    for l in range(len(layer_dims)):
        w = params[f"w{l}"].astype(jnp.bfloat16)
        h = jnp.dot(h, w, preferred_element_type=jnp.float32) + params[f"b{l}"]
        h = jnp.maximum(h, 0.0).astype(jnp.bfloat16)
    wo = params["w_out"].astype(jnp.bfloat16)
    return jnp.dot(h, wo, preferred_element_type=jnp.float32) + params["b_out"]


if __name__ == "__main__":
    # Small shapes consistent with the module (e.g. a TD3 critic/value head).
    batch = 8
    input_dims = 12
    layer_dims = [32, 32]
    output_dims = 1

    key = jax.random.PRNGKey(0)
    kx, kp = jax.random.split(key)

    x = jax.random.normal(kx, (batch, input_dims), jnp.float32)
    params = init_params(kp, input_dims, layer_dims, output_dims)
    packed = pack_params(params, input_dims, layer_dims, output_dims)

    # TODO(synk): checkpoint save/load and the AdamW optimizer are host-side
    # PyTorch machinery with no Pallas equivalent; only forward() is kernelized.

    y = mlp_forward(x, packed, output_dims)
    y = jax.block_until_ready(y)

    y_ref = mlp_reference(x, params, layer_dims)
    assert y.shape == (batch, output_dims)
    assert jnp.allclose(y, y_ref, atol=2e-3, rtol=2e-3), "mismatch vs JAX reference"

    print("KERNEL_OK")
</pallas_src>

<mosaic_0001>
module attributes {stable_mosaic.version = 11 : i64} {
  func.func @kernel(%arg0: i32, %arg1: memref<8x16xbf16, #tpu.memory_space<vmem>>, %arg2: memref<272x128xbf16, #tpu.memory_space<vmem>>, %arg3: memref<3x128xf32, #tpu.memory_space<vmem>>, %arg4: memref<8x1xf32, #tpu.memory_space<vmem>>) attributes {dimension_semantics = [#tpu.dimension_semantics<parallel>], iteration_bounds = array<i64: 1>, scalar_prefetch = 0 : i64, scratch_operands = 0 : i64, tpu.core_type = #tpu.core_type<tc>, window_params = [{transform_indices = @transform_0, window_bounds = array<i64: 8, 16>}, {pipeline_mode = #tpu.pipeline_mode<synchronous>, transform_indices = @transform_1, window_bounds = array<i64: 272, 128>}, {pipeline_mode = #tpu.pipeline_mode<synchronous>, transform_indices = @transform_2, window_bounds = array<i64: 3, 128>}, {transform_indices = @transform_3, window_bounds = array<i64: 8, 1>}]} {
    %c0 = arith.constant 0 : index
    %c0_0 = arith.constant 0 : index
    %0 = vector.load %arg1[%c0, %c0_0] : memref<8x16xbf16, #tpu.memory_space<vmem>>, vector<8x16xbf16>
    %c0_1 = arith.constant 0 : index
    %c0_2 = arith.constant 0 : index
    %1 = vector.load %arg2[%c0_1, %c0_2] : memref<272x128xbf16, #tpu.memory_space<vmem>>, vector<16x128xbf16>
    %c0_3 = arith.constant 0 : index
    %c0_4 = arith.constant 0 : index
    %2 = vector.load %arg3[%c0_3, %c0_4] : memref<3x128xf32, #tpu.memory_space<vmem>>, vector<1x128xf32>
    %cst = arith.constant dense<0.000000e+00> : vector<8x128xf32>
    %3 = tpu.matmul %0, %1, %cst {dimension_numbers = #tpu.dot_dimension_numbers<[1], [0], [0], [1], [0, 0, 1, 1], [], []>} : vector<8x16xbf16>, vector<16x128xbf16>, vector<8x128xf32> -> vector<8x128xf32>
    %4 = vector.broadcast %2 : vector<1x128xf32> to vector<8x128xf32>
    %5 = arith.addf %3, %4 : vector<8x128xf32>
    %cst_5 = arith.constant 0.000000e+00 : f32
    %6 = vector.broadcast %cst_5 : f32 to vector<8x128xf32>
    %7 = arith.maximumf %5, %6 : vector<8x128xf32>
    %8 = arith.truncf %7 : vector<8x128xf32> to vector<8x128xbf16>
    %c16 = arith.constant 16 : index
    %c0_6 = arith.constant 0 : index
    %9 = vector.load %arg2[%c16, %c0_6] : memref<272x128xbf16, #tpu.memory_space<vmem>>, vector<128x128xbf16>
    %c1 = arith.constant 1 : index
    %c0_7 = arith.constant 0 : index
    %10 = vector.load %arg3[%c1, %c0_7] : memref<3x128xf32, #tpu.memory_space<vmem>>, vector<1x128xf32>
    %cst_8 = arith.constant dense<0.000000e+00> : vector<8x128xf32>
    %11 = tpu.matmul %8, %9, %cst_8 {dimension_numbers = #tpu.dot_dimension_numbers<[1], [0], [0], [1], [0, 0, 1, 1], [], []>} : vector<8x128xbf16>, vector<128x128xbf16>, vector<8x128xf32> -> vector<8x128xf32>
    %12 = vector.broadcast %10 : vector<1x128xf32> to vector<8x128xf32>
    %13 = arith.addf %11, %12 : vector<8x128xf32>
    %cst_9 = arith.constant 0.000000e+00 : f32
    %14 = vector.broadcast %cst_9 : f32 to vector<8x128xf32>
    %15 = arith.maximumf %13, %14 : vector<8x128xf32>
    %16 = arith.truncf %15 : vector<8x128xf32> to vector<8x128xbf16>
    %c144 = arith.constant 144 : index
    %c0_10 = arith.constant 0 : index
    %17 = vector.load %arg2[%c144, %c0_10] : memref<272x128xbf16, #tpu.memory_space<vmem>>, vector<128x128xbf16>
    %c2 = arith.constant 2 : index
    %c0_11 = arith.constant 0 : index
    %18 = vector.load %arg3[%c2, %c0_11] : memref<3x128xf32, #tpu.memory_space<vmem>>, vector<1x128xf32>
    %cst_12 = arith.constant dense<0.000000e+00> : vector<8x128xf32>
    %19 = tpu.matmul %16, %17, %cst_12 {dimension_numbers = #tpu.dot_dimension_numbers<[1], [0], [0], [1], [0, 0, 1, 1], [], []>} : vector<8x128xbf16>, vector<128x128xbf16>, vector<8x128xf32> -> vector<8x128xf32>
    %20 = vector.broadcast %18 : vector<1x128xf32> to vector<8x128xf32>
    %21 = arith.addf %19, %20 : vector<8x128xf32>
    %22 = vector.extract_strided_slice %21 {offsets = [0, 0], sizes = [8, 1], strides = [1, 1]} : vector<8x128xf32> to vector<8x1xf32>
    %c0_13 = arith.constant 0 : index
    %c0_14 = arith.constant 0 : index
    %23 = vector.load %arg4[%c0_13, %c0_14] : memref<8x1xf32, #tpu.memory_space<vmem>>, vector<8x1xf32>
    tpu.vector_store %arg4[%c0_13, %c0_14], %22 {strides = array<i32>} : memref<8x1xf32, #tpu.memory_space<vmem>>, vector<8x1xf32>,
    return
  }
  func.func @transform_0(%arg0: i32) -> (i32, i32) {
    %c0_i32 = arith.constant 0 : i32
    %c0_i32_0 = arith.constant 0 : i32
    return %arg0, %c0_i32 : i32, i32
  }
  func.func @transform_1(%arg0: i32) -> (i32, i32) {
    %c0_i32 = arith.constant 0 : i32
    %c0_i32_0 = arith.constant 0 : i32
    %c0_i32_1 = arith.constant 0 : i32
    return %c0_i32, %c0_i32_0 : i32, i32
  }
  func.func @transform_2(%arg0: i32) -> (i32, i32) {
    %c0_i32 = arith.constant 0 : i32
    %c0_i32_0 = arith.constant 0 : i32
    %c0_i32_1 = arith.constant 0 : i32
    return %c0_i32, %c0_i32_0 : i32, i32
  }
  func.func @transform_3(%arg0: i32) -> (i32, i32) {
    %c0_i32 = arith.constant 0 : i32
    %c0_i32_0 = arith.constant 0 : i32
    return %arg0, %c0_i32 : i32, i32
  }
}

</mosaic_0001>

<bundles_post_ra>
// kernel: tpu_custom_call.1
= control target key start
LH: loop header
LB: loop body
LE: loop exit
PB: predicated region body
PF: predicated region fallthrough
CT: control target
= control target key end

     0   :  { %8 = vsyncpa [#allocation3], 0  ;;  %s574_s0 = inlined_call_operand.hbm [shape: bf16[8,16], index: 0, kind: input, shape index: {}]   ;;  %s575_s1 = inlined_call_operand.hbm [shape: bf16[272,128], index: 1, kind: input, shape index: {}]   ;;  %s576_s2 = inlined_call_operand.hbm [shape: f32[3,128], index: 2, kind: input, shape index: {}]   ;;  %s577_s3 = inlined_call_operand.vmem [shape: f32[8,1], index: 3, kind: output, shape index: {}]  }
   0x1   :  { %9 = vsyncpa [#allocation5], 0  ;;  %s515_s12 = smov [#allocation4]  }
   0x2   :  { %s25_s13 = sshll.u32 %s515_s12, 4  ;;  %s26_s13 = int_to_ptr.vmem [resolvable:$true] %s25_s13 }
   0x3   :  { %s459_s14 = scalar_lea.vmem %s26_s13, 2176  ;;  %p464_p1 = scmp.lt.s32.totalorder %s26_s13, %s26_s13 }
   0x4   :  { %p460_p0 = scmp.ne.s32.totalorder %s26_s13, %s459_s14  ;;  %p465_p2 = scmp.lt.s32.totalorder %s459_s14, %s459_s14 }
   0x6   :  { %p466_p3 = por %p465_p2, %p464_p1 }
   0x8   :  { %p467_p4 = pnand %p466_p3, %p460_p0 }
   0xa   :  { %470 = shalt.err (!%p467_p4)
}
   0xb   :  { %s516_s15 = smov 64   ;;  %s517_s16 = smov 4  }
   0xc   :  { %31 = dma.hbm_to_vmem [thread:$0]  %s575_s1, 2176, %s26_s13, [#allocation5], %s516_s15, %s516_s15, %s517_s16  }
   0xd   :  { %s518_s19 = smov [#allocation2]   ;;  %s519_s21 = smov [#allocation6]  }
   0xe   :  { %s16_s20 = sshll.u32 %s518_s19, 4  ;;  %s38_s22 = sshll.u32 %s519_s21, 4  ;;  %s17_s20 = int_to_ptr.vmem [resolvable:$true] %s16_s20  ;;  %s39_s22 = int_to_ptr.vmem [resolvable:$true] %s38_s22 }
   0xf   :  { %s479_s23 = scalar_lea.vmem %s17_s20, 64  ;;  %p484_p6 = scmp.lt.s32.totalorder %s17_s20, %s17_s20 }
  0x10   :  { %p480_p5 = scmp.ne.s32.totalorder %s17_s20, %s479_s23  ;;  %p485_p7 = scmp.lt.s32.totalorder %s479_s23, %s479_s23 }
  0x12   :  { %p486_p8 = por %p485_p7, %p484_p6 }
  0x14   :  { %p487_p9 = pnand %p486_p8, %p480_p5 }
  0x16   :  { %490 = shalt.err (!%p487_p9)
}
  0x17   :  { %19 = dma.hbm_to_vmem [thread:$0]  %s574_s0, 64, %s17_s20, [#allocation3]  }
  0x18   :  { %s499_s26 = scalar_lea.vmem %s39_s22, 64  ;;  %p504_p11 = scmp.lt.s32.totalorder %s39_s22, %s39_s22 }
  0x19   :  { %p500_p10 = scmp.ne.s32.totalorder %s39_s22, %s499_s26  ;;  %p505_p12 = scmp.lt.s32.totalorder %s499_s26, %s499_s26 }
  0x1b   :  { %p506_p13 = por %p505_p12, %p504_p11 }
  0x1d   :  { %p507_p0 = pnand %p506_p13, %p500_p10 }
  0x1f   :  { %510 = shalt.err (!%p507_p0)
}
  0x20   :  { %41 = dma.hbm_to_vmem [thread:$0]  %s576_s2, 64, %s39_s22, [#allocation5]  }
  0x21   :  { %511 = dma.done.wait [#allocation3], 64  }
  0x22   :  { %512 = vsyncadd [#allocation3], 4294967232 }
  0x23   :  { %513 = dma.done.wait [#allocation5], 2240  }
  0x24   :  { %514 = vsyncadd [#allocation5], 4294965056  ;;  %v520_v0 = vmov 0.0   ;;  %vm521_vm0 = vmmov 0   ;;  %v434_v1 = vld [vmem:[#allocation4] sm:$0xff]   ;;  %vm66_vm1 = vcmask 130048  }
  0x25   :  { %381 = vmatprep.subr.bf16.mxu0 %v520_v0  ;;  %383 = vmatprep.mubr.msk.bf16.mxu0 %vm521_vm0, %v520_v0  ;;  %v52_v2 = vld [vmem:[#allocation2] sm:$0xf]  ;;  %v435_v3 = vld [vmem:[#allocation4 + $0x40] sm:$0xff]   ;;  %v437_v5 = vld [vmem:[#allocation4 + $0x30] sm:$0xff]   ;;  %vm332_vm2 = vcmask 7168  }
  0x26   :  { %387 = vmatprep.subr.bf16.mxu1 %v520_v0  ;;  %403 = vmatprep.mubr.msk.bf16.mxu1 %vm521_vm0, %v520_v0  ;;  %v436_v4 = vld [vmem:[#allocation4 + $0x38] sm:$0xff]   ;;  %v438_v6 = vld [vmem:[#allocation4 + $0x28] sm:$0xff]   ;;  %v439_v7 = vld [vmem:[#allocation4 + $0x20] sm:$0xff]  }
  0x27   :  { %382 = vmatpush3.bf16.msra.mxu0 %v434_v1  ;;  %388 = vmatpush3.bf16.msra.mxu1 %v435_v3  ;;  %v440_v8 = vld [vmem:[#allocation4 + $0x18] sm:$0xff]   ;;  %v441_v9 = vld [vmem:[#allocation4 + $0x10] sm:$0xff]   ;;  %v442_v10 = vld [vmem:[#allocation4 + $0x8] sm:$0xff]  }
  0x28   :  { %407 = vmatprep.subr.bf16.mxu0 %v520_v0  ;;  %389 = vmatprep.subr.bf16.mxu1 %v520_v0  ;;  %v443_v11 = vld [vmem:[#allocation4 + $0x80] sm:$0xff]   ;;  %v444_v12 = vld [vmem:[#allocation4 + $0x78] sm:$0xff]   ;;  %v445_v13 = vld [vmem:[#allocation4 + $0x70] sm:$0xff]  }
  0x29   :  { %v446_v14 = vld [vmem:[#allocation4 + $0x68] sm:$0xff]   ;;  %v447_v15 = vld [vmem:[#allocation4 + $0x60] sm:$0xff]   ;;  %v448_v16 = vld [vmem:[#allocation4 + $0x58] sm:$0xff]  }
  0x2a   :  { %384 = vmatmul.mubr.msk.bf16.vlgmr.msra.gmra.mxu0 %vm66_vm1, %v52_v2  ;;  %v340_v17 = vld [vmem:[#allocation6] ss:$0 sm:$0xff]  ;;  %v449_v25 = vld [vmem:[#allocation4 + $0x50] sm:$0xff]   ;;  %v343_v27 = vld [vmem:[#allocation6 + $0x1] ss:$0 sm:$0xff] }
  0x2b   :  { %423 = vmatprep.mubr.msk.bf16.mxu0 %vm521_vm0, %v520_v0  ;;  %390 = vmatpush3.bf16.msra.mxu1 %v436_v4  ;;  %v450_v26 = vld [vmem:[#allocation4 + $0x48] sm:$0xff]  }
  0x2c   :  { %391 = vmatprep.subr.bf16.mxu1 %v520_v0  ;;  %408 = vmatpush3.bf16.msra.mxu0 %v443_v11  ;;  %v352_v35 = vld [vmem:[#allocation6 + $0x2] ss:$0 sm:$0xff] }
  0x2d   :  { %409 = vmatprep.subr.bf16.mxu0 %v520_v0 }
  0x2f   :  { %392 = vmatpush3.bf16.msra.mxu1 %v437_v5 }
  0x30   :  { %393 = vmatprep.subr.bf16.mxu1 %v520_v0  ;;  %410 = vmatpush3.bf16.msra.mxu0 %v444_v12 }
  0x31   :  { %411 = vmatprep.subr.bf16.mxu0 %v520_v0 }
  0x33   :  { %394 = vmatpush3.bf16.msra.mxu1 %v438_v6 }
  0x34   :  { %395 = vmatprep.subr.bf16.mxu1 %v520_v0  ;;  %412 = vmatpush3.bf16.msra.mxu0 %v445_v13 }
  0x35   :  { %413 = vmatprep.subr.bf16.mxu0 %v520_v0 }
  0x37   :  { %396 = vmatpush3.bf16.msra.mxu1 %v439_v7 }
  0x38   :  { %397 = vmatprep.subr.bf16.mxu1 %v520_v0  ;;  %414 = vmatpush3.bf16.msra.mxu0 %v446_v14 }
  0x39   :  { %415 = vmatprep.subr.bf16.mxu0 %v520_v0 }
  0x3b   :  { %398 = vmatpush3.bf16.msra.mxu1 %v440_v8 }
  0x3c   :  { %399 = vmatprep.subr.bf16.mxu1 %v520_v0  ;;  %416 = vmatpush3.bf16.msra.mxu0 %v447_v15 }
  0x3d   :  { %417 = vmatprep.subr.bf16.mxu0 %v520_v0 }
  0x3f   :  { %400 = vmatpush3.bf16.msra.mxu1 %v441_v9 }
  0x40   :  { %401 = vmatprep.subr.bf16.mxu1 %v520_v0  ;;  %418 = vmatpush3.bf16.msra.mxu0 %v448_v16 }
  0x41   :  { %419 = vmatprep.subr.bf16.mxu0 %v520_v0 }
  0x43   :  { %402 = vmatpush3.bf16.msra.mxu1 %v442_v10 }
  0x44   :  { %420 = vmatpush3.bf16.msra.mxu0 %v449_v25 }
  0x45   :  { %421 = vmatprep.subr.bf16.mxu0 %v520_v0 }
  0x48   :  { %422 = vmatpush3.bf16.msra.mxu0 %v450_v26 }
  0xea   :  { %v104_v18 = vpop.f32.mrf.mxu0 }
  0xeb   :  { %v105_v19 = vadd.f32 %v340_v17, %v104_v18 }
  0xec   :  { %v385_v20 = vpop.f32.mrf.mxu0 }
  0xed   :  { %v110_v21 = vmax.f32 %v105_v19, 0.0 }
  0xee   :  { %v107_v22 = vpop.f32.mrf.mxu0 }
  0xef   :  { %v111_v23 = vpack.c.bf16 %v110_v21, %v110_v21 }
  0xf0   :  { %v386_v24 = vpop.f32.mrf.mxu0 }
  0xf1   :  { %404 = vmatmul.mubr.bf16.vlgmr.msra.gmra.mxu1 %v111_v23 }
 0x1b1   :  { %v215_v28 = vpop.f32.mrf.mxu1 }
 0x1b2   :  { %v216_v29 = vadd.f32 %v343_v27, %v215_v28 }
 0x1b3   :  { %v405_v30 = vpop.f32.mrf.mxu1 }
 0x1b4   :  { %v221_v31 = vmax.f32 %v216_v29, 0.0 }
 0x1b5   :  { %v218_v32 = vpop.f32.mrf.mxu1 }
 0x1b6   :  { %v222_v33 = vpack.c.bf16 %v221_v31, %v221_v31 }
 0x1b7   :  { %v406_v34 = vpop.f32.mrf.mxu1 }
 0x1b8   :  { %424 = vmatmul.mubr.bf16.vlgmr.msra.gmra.mxu0 %v222_v33 }
 0x278   :  { %v326_v36 = vpop.f32.mrf.mxu0 }
 0x279   :  { %v327_v37 = vadd.f32 %v352_v35, %v326_v36 }
 0x27a   :  { %v425_v38 = vpop.f32.mrf.mxu0 }
 0x27b   :  { %333 = vst.msk [vmem:[%s577_s3] sm:$0xff] %vm332_vm2, %v327_v37 }
 0x27c   :  { %v329_v39 = vpop.f32.mrf.mxu0 }
 0x27e   :  { %v426_v40 = vpop.f32.mrf.mxu0 }
 0x27f   :  { %338 = vsyncpa [#allocation3], 1 }
 0x280   :  { %339 = vsyncpa [#allocation5], 1 }

</bundles_post_ra>
